<compile_context>
chip_gen: v6e
topology: v6e:2x2x1
jax: 0.10.0
libtpu: 0.0.40
codegen_flags: <defaults>
</compile_context>

<pallas_src>
import jax
import jax.numpy as jnp
from jax import lax
from jax.experimental import pallas as pl
from jax.experimental.pallas import tpu as pltpu


def _attention_kernel(in_ref, src_ref, wi_t_ref, wo_ctx_t_ref, wo_in_t_ref,
                      *out_refs):
    # in_ref      : (T_blk, Din)   one batch element, one T tile (batch squeezed)
    # src_ref     : (S, Dsrc)      one batch element, full source length
    # wi_t_ref    : (Din, Dsrc)    input_proj weight, pre-transposed
    # wo_ctx_t_ref: (Dsrc, Dout)   output_proj weight (ctx half), pre-transposed
    # wo_in_t_ref : (Din, Dout)    output_proj weight (input half), pre-transposed
    # out_refs[0] : (T_blk, Dout)
    # out_refs[1] : (T_blk, S) float32   (only present when attn is requested)
    out_ref = out_refs[0]
    attn_out_ref = out_refs[1] if len(out_refs) > 1 else None

    x = in_ref[...]                      # native dtype, no forced f32 cast
    src = src_ref[...]                   # native dtype

    # ---- projections (f32 MXU accumulation) --------------------------------
    xp = jnp.dot(x, wi_t_ref[...], preferred_element_type=jnp.float32)
    o_in = jnp.dot(x, wo_in_t_ref[...], preferred_element_type=jnp.float32)

    # ---- scores[t, s] = sum_h xp[t, h] * src[s, h]  (once per grid step) ----
    scores = lax.dot_general(
        xp.astype(x.dtype), src, (((1,), (1,)), ((), ())),
        preferred_element_type=jnp.float32)              # (T_blk, S) f32

    # ---- softmax over source axis -------------------------------------------
    m = scores.max(axis=-1, keepdims=True)
    p = jnp.exp(scores - m)
    denom = p.sum(axis=-1, keepdims=True)
    r = pl.reciprocal(denom, approx=True)                # EUP slot
    r = r * (2.0 - denom * r)                            # one Newton step
    attn = p * r                                         # (T_blk, S) f32

    # ---- ctx and output_proj -------------------------------------------------
    ctx = jnp.dot(attn.astype(src.dtype), src,
                  preferred_element_type=jnp.float32)    # (T_blk, Dsrc) f32
    out = jnp.tanh(
        jnp.dot(ctx.astype(x.dtype), wo_ctx_t_ref[...],
                preferred_element_type=jnp.float32) + o_in)

    out_ref[...] = out.astype(out_ref.dtype)             # full lane-dense store
    if attn_out_ref is not None:
        attn_out_ref[...] = attn.astype(attn_out_ref.dtype)


def _vmem_limit_bytes():
    # Generation-aware: ~75% of physical per-core VMEM, capped at 96 MiB
    # (v5e/v6e: 128 MiB physical -> 96 MiB; v7x: 64 MiB physical -> 48 MiB).
    try:
        cap = pltpu.get_tpu_info().vmem_capacity_bytes
        return min(int(cap * 3) // 4, 96 * 1024 * 1024)
    except Exception:
        return 64 * 1024 * 1024


def attention_layer(inp_tbh, src_sbh, wi, wo, *, t_block=256, return_attn=True):
    """inp_tbh: (T, B, Din), src_sbh: (S, B, Dsrc),
       wi: (Dsrc, Din), wo: (Dout, Dsrc + Din)   [nn.Linear (out, in) layout]
       Returns (out (T, B, Dout), attn (T, S, B) float32 or None)."""
    T, B, Din = inp_tbh.shape
    S, Bs, Dsrc = src_sbh.shape
    assert Bs == B
    Dout = wo.shape[0]

    # One-time weight prep outside the kernel (torch cat order is (ctx, input)).
    wi_t = jnp.transpose(wi)                  # (Din, Dsrc)
    wo_ctx_t = jnp.transpose(wo[:, :Dsrc])    # (Dsrc, Dout)
    wo_in_t = jnp.transpose(wo[:, Dsrc:])     # (Din, Dout)

    # One-time batch-major relayout so every kernel tile is lane/sublane dense.
    inp_btd = jnp.transpose(inp_tbh, (1, 0, 2))   # (B, T, Din)
    src_bsd = jnp.transpose(src_sbh, (1, 0, 2))   # (B, S, Dsrc)

    T_blk = T if T <= t_block else t_block
    n_t = pl.cdiv(T, T_blk)

    in_specs = [
        pl.BlockSpec((None, T_blk, Din), lambda b, t: (b, t, 0)),
        pl.BlockSpec((None, S, Dsrc), lambda b, t: (b, 0, 0)),   # t-invariant
        pl.BlockSpec((Din, Dsrc), lambda b, t: (0, 0)),          # constant
        pl.BlockSpec((Dsrc, Dout), lambda b, t: (0, 0)),         # constant
        pl.BlockSpec((Din, Dout), lambda b, t: (0, 0)),          # constant
    ]
    if return_attn:
        out_shape = (
            jax.ShapeDtypeStruct((B, T, Dout), inp_tbh.dtype),
            jax.ShapeDtypeStruct((B, T, S), jnp.float32),
        )
        out_specs = (
            pl.BlockSpec((None, T_blk, Dout), lambda b, t: (b, t, 0)),
            pl.BlockSpec((None, T_blk, S), lambda b, t: (b, t, 0)),
        )
    else:
        out_shape = jax.ShapeDtypeStruct((B, T, Dout), inp_tbh.dtype)
        out_specs = pl.BlockSpec((None, T_blk, Dout), lambda b, t: (b, t, 0))

    res = pl.pallas_call(
        _attention_kernel,
        out_shape=out_shape,
        grid_spec=pltpu.PrefetchScalarGridSpec(
            num_scalar_prefetch=0,
            grid=(B, n_t),                     # t innermost -> src not re-fetched
            in_specs=in_specs,
            out_specs=out_specs,
        ),
        compiler_params=pltpu.CompilerParams(
            dimension_semantics=("parallel", "parallel"),
            vmem_limit_bytes=_vmem_limit_bytes()),
    )(inp_btd, src_bsd, wi_t, wo_ctx_t, wo_in_t)

    if return_attn:
        out_b, attn_b = res
        out = jnp.transpose(out_b, (1, 0, 2))        # (T, B, Dout), time-major
        attn = jnp.transpose(attn_b, (1, 2, 0))      # (B,T,S) -> (T, S, B)
        return out, attn
    out = jnp.transpose(res, (1, 0, 2))
    return out, None


def _reference(inp_tbh, src_sbh, wi, wo):
    x = jnp.einsum('tbi,si->tbs', inp_tbh, wi)                # input_proj
    scores = jnp.einsum('sbh,tbh->tsb', src_sbh, x)
    attn = jax.nn.softmax(scores, axis=1)
    ctx = jnp.einsum('tsb,sbh->tbh', attn, src_sbh)
    cat = jnp.concatenate((ctx, inp_tbh), axis=-1)
    out = jnp.tanh(jnp.einsum('tbc,oc->tbo', cat, wo))
    return out, attn


if __name__ == "__main__":
    # small shapes consistent with the module's (seq, batch, hidden) convention
    T, S, B = 8, 8, 2
    Din, Dsrc, Dout = 32, 32, 32

    key = jax.random.PRNGKey(0)
    k1, k2, k3, k4 = jax.random.split(key, 4)
    inp = jax.random.normal(k1, (T, B, Din), dtype=jnp.float32)
    src = jax.random.normal(k2, (S, B, Dsrc), dtype=jnp.float32)
    # deterministic synthetic weights (nn.Linear convention: (out, in))
    wi = 0.1 * jax.random.normal(k3, (Dsrc, Din), dtype=jnp.float32)
    wo = 0.1 * jax.random.normal(k4, (Dout, Dsrc + Din), dtype=jnp.float32)

    out, attn = attention_layer(inp, src, wi, wo)
    jax.block_until_ready((out, attn))

    ref_out, ref_attn = _reference(inp, src, wi, wo)
    assert out.shape == (T, B, Dout) and attn.shape == (T, S, B)
    assert jnp.allclose(out, ref_out, atol=1e-4, rtol=1e-4)
    assert jnp.allclose(attn, ref_attn, atol=1e-4, rtol=1e-4)

    # attn-optional path (saves the largest HBM write + transpose entirely)
    out_only, _ = attention_layer(inp, src, wi, wo, return_attn=False)
    jax.block_until_ready(out_only)
    assert jnp.allclose(out_only, ref_out, atol=1e-4, rtol=1e-4)

    print("KERNEL_OK")
</pallas_src>

<mosaic_0001>
module attributes {stable_mosaic.version = 11 : i64} {
  func.func @_attention_kernel(%arg0: i32, %arg1: i32, %arg2: memref<1x8x32xf32, #tpu.memory_space<vmem>>, %arg3: memref<1x8x32xf32, #tpu.memory_space<vmem>>, %arg4: memref<32x32xf32, #tpu.memory_space<vmem>>, %arg5: memref<32x32xf32, #tpu.memory_space<vmem>>, %arg6: memref<32x32xf32, #tpu.memory_space<vmem>>, %arg7: memref<1x8x32xf32, #tpu.memory_space<vmem>>, %arg8: memref<1x8x8xf32, #tpu.memory_space<vmem>>) attributes {dimension_semantics = [#tpu.dimension_semantics<parallel>, #tpu.dimension_semantics<parallel>], iteration_bounds = array<i64: 2, 1>, scalar_prefetch = 0 : i64, scratch_operands = 0 : i64, tpu.core_type = #tpu.core_type<tc>, window_params = [{transform_indices = @transform_0, window_bounds = array<i64: 1, 8, 32>}, {transform_indices = @transform_1, window_bounds = array<i64: 1, 8, 32>}, {pipeline_mode = #tpu.pipeline_mode<synchronous>, transform_indices = @transform_2, window_bounds = array<i64: 32, 32>}, {pipeline_mode = #tpu.pipeline_mode<synchronous>, transform_indices = @transform_3, window_bounds = array<i64: 32, 32>}, {pipeline_mode = #tpu.pipeline_mode<synchronous>, transform_indices = @transform_4, window_bounds = array<i64: 32, 32>}, {transform_indices = @transform_5, window_bounds = array<i64: 1, 8, 32>}, {transform_indices = @transform_6, window_bounds = array<i64: 1, 8, 8>}]} {
    %c0 = arith.constant 0 : index
    %c0_0 = arith.constant 0 : index
    %c0_1 = arith.constant 0 : index
    %0 = vector.load %arg2[%c0, %c0_0, %c0_1] : memref<1x8x32xf32, #tpu.memory_space<vmem>>, vector<1x8x32xf32>
    %1 = vector.shape_cast %0 : vector<1x8x32xf32> to vector<8x32xf32>
    %c0_2 = arith.constant 0 : index
    %c0_3 = arith.constant 0 : index
    %c0_4 = arith.constant 0 : index
    %2 = vector.load %arg3[%c0_2, %c0_3, %c0_4] : memref<1x8x32xf32, #tpu.memory_space<vmem>>, vector<1x8x32xf32>
    %3 = vector.shape_cast %2 : vector<1x8x32xf32> to vector<8x32xf32>
    %c0_5 = arith.constant 0 : index
    %c0_6 = arith.constant 0 : index
    %4 = vector.load %arg4[%c0_5, %c0_6] : memref<32x32xf32, #tpu.memory_space<vmem>>, vector<32x32xf32>
    %cst = arith.constant dense<0.000000e+00> : vector<8x32xf32>
    %5 = tpu.matmul %1, %4, %cst {dimension_numbers = #tpu.dot_dimension_numbers<[1], [0], [0], [1], [0, 0, 1, 1], [], []>} : vector<8x32xf32>, vector<32x32xf32>, vector<8x32xf32> -> vector<8x32xf32>
    %c0_7 = arith.constant 0 : index
    %c0_8 = arith.constant 0 : index
    %6 = vector.load %arg6[%c0_7, %c0_8] : memref<32x32xf32, #tpu.memory_space<vmem>>, vector<32x32xf32>
    %cst_9 = arith.constant dense<0.000000e+00> : vector<8x32xf32>
    %7 = tpu.matmul %1, %6, %cst_9 {dimension_numbers = #tpu.dot_dimension_numbers<[1], [0], [0], [1], [0, 0, 1, 1], [], []>} : vector<8x32xf32>, vector<32x32xf32>, vector<8x32xf32> -> vector<8x32xf32>
    %cst_10 = arith.constant dense<0.000000e+00> : vector<8x8xf32>
    %8 = tpu.matmul %5, %3, %cst_10 {dimension_numbers = #tpu.dot_dimension_numbers<[1], [1], [0], [0], [0, 0, 1, 0], [], []>} : vector<8x32xf32>, vector<8x32xf32>, vector<8x8xf32> -> vector<8x8xf32>
    %cst_11 = arith.constant dense<0xFF800000> : vector<8xf32>
    %9 = vector.multi_reduction <maximumf>, %8, %cst_11 [1] : vector<8x8xf32> to vector<8xf32>
    %10 = vector.shape_cast %9 : vector<8xf32> to vector<8x1xf32>
    %11 = vector.broadcast %10 : vector<8x1xf32> to vector<8x8xf32>
    %12 = arith.subf %8, %11 : vector<8x8xf32>
    %13 = math.exp %12 : vector<8x8xf32>
    %cst_12 = arith.constant dense<0.000000e+00> : vector<8xf32>
    %14 = vector.multi_reduction <add>, %13, %cst_12 [1] : vector<8x8xf32> to vector<8xf32>
    %15 = vector.shape_cast %14 : vector<8xf32> to vector<8x1xf32>
    %16 = tpu.reciprocal %15 {approx = true} : vector<8x1xf32> -> vector<8x1xf32>
    %17 = arith.mulf %15, %16 : vector<8x1xf32>
    %cst_13 = arith.constant 2.000000e+00 : f32
    %18 = vector.broadcast %cst_13 : f32 to vector<8x1xf32>
    %19 = arith.subf %18, %17 : vector<8x1xf32>
    %20 = arith.mulf %16, %19 : vector<8x1xf32>
    %21 = vector.broadcast %20 : vector<8x1xf32> to vector<8x8xf32>
    %22 = arith.mulf %13, %21 : vector<8x8xf32>
    %cst_14 = arith.constant dense<0.000000e+00> : vector<8x32xf32>
    %23 = tpu.matmul %22, %3, %cst_14 {dimension_numbers = #tpu.dot_dimension_numbers<[1], [0], [0], [1], [0, 0, 1, 1], [], []>} : vector<8x8xf32>, vector<8x32xf32>, vector<8x32xf32> -> vector<8x32xf32>
    %c0_15 = arith.constant 0 : index
    %c0_16 = arith.constant 0 : index
    %24 = vector.load %arg5[%c0_15, %c0_16] : memref<32x32xf32, #tpu.memory_space<vmem>>, vector<32x32xf32>
    %cst_17 = arith.constant dense<0.000000e+00> : vector<8x32xf32>
    %25 = tpu.matmul %23, %24, %cst_17 {dimension_numbers = #tpu.dot_dimension_numbers<[1], [0], [0], [1], [0, 0, 1, 1], [], []>} : vector<8x32xf32>, vector<32x32xf32>, vector<8x32xf32> -> vector<8x32xf32>
    %26 = arith.addf %25, %7 : vector<8x32xf32>
    %27 = math.tanh %26 : vector<8x32xf32>
    %c0_18 = arith.constant 0 : index
    %c0_19 = arith.constant 0 : index
    %c0_20 = arith.constant 0 : index
    %28 = vector.load %arg7[%c0_18, %c0_19, %c0_20] : memref<1x8x32xf32, #tpu.memory_space<vmem>>, vector<1x8x32xf32>
    %29 = vector.shape_cast %28 : vector<1x8x32xf32> to vector<8x32xf32>
    %30 = vector.shape_cast %27 : vector<8x32xf32> to vector<1x8x32xf32>
    tpu.vector_store %arg7[%c0_18, %c0_19, %c0_20], %30 {strides = array<i32>} : memref<1x8x32xf32, #tpu.memory_space<vmem>>, vector<1x8x32xf32>,
    %c0_21 = arith.constant 0 : index
    %c0_22 = arith.constant 0 : index
    %c0_23 = arith.constant 0 : index
    %31 = vector.load %arg8[%c0_21, %c0_22, %c0_23] : memref<1x8x8xf32, #tpu.memory_space<vmem>>, vector<1x8x8xf32>
    %32 = vector.shape_cast %31 : vector<1x8x8xf32> to vector<8x8xf32>
    %33 = vector.shape_cast %22 : vector<8x8xf32> to vector<1x8x8xf32>
    tpu.vector_store %arg8[%c0_21, %c0_22, %c0_23], %33 {strides = array<i32>} : memref<1x8x8xf32, #tpu.memory_space<vmem>>, vector<1x8x8xf32>,
    return
  }
  func.func @transform_0(%arg0: i32, %arg1: i32) -> (i32, i32, i32) {
    %c0_i32 = arith.constant 0 : i32
    %c0_i32_0 = arith.constant 0 : i32
    return %arg0, %arg1, %c0_i32 : i32, i32, i32
  }
  func.func @transform_1(%arg0: i32, %arg1: i32) -> (i32, i32, i32) {
    %c0_i32 = arith.constant 0 : i32
    %c0_i32_0 = arith.constant 0 : i32
    %c0_i32_1 = arith.constant 0 : i32
    return %arg0, %c0_i32, %c0_i32_0 : i32, i32, i32
  }
  func.func @transform_2(%arg0: i32, %arg1: i32) -> (i32, i32) {
    %c0_i32 = arith.constant 0 : i32
    %c0_i32_0 = arith.constant 0 : i32
    %c0_i32_1 = arith.constant 0 : i32
    return %c0_i32, %c0_i32_0 : i32, i32
  }
  func.func @transform_3(%arg0: i32, %arg1: i32) -> (i32, i32) {
    %c0_i32 = arith.constant 0 : i32
    %c0_i32_0 = arith.constant 0 : i32
    %c0_i32_1 = arith.constant 0 : i32
    return %c0_i32, %c0_i32_0 : i32, i32
  }
  func.func @transform_4(%arg0: i32, %arg1: i32) -> (i32, i32) {
    %c0_i32 = arith.constant 0 : i32
    %c0_i32_0 = arith.constant 0 : i32
    %c0_i32_1 = arith.constant 0 : i32
    return %c0_i32, %c0_i32_0 : i32, i32
  }
  func.func @transform_5(%arg0: i32, %arg1: i32) -> (i32, i32, i32) {
    %c0_i32 = arith.constant 0 : i32
    %c0_i32_0 = arith.constant 0 : i32
    return %arg0, %arg1, %c0_i32 : i32, i32, i32
  }
  func.func @transform_6(%arg0: i32, %arg1: i32) -> (i32, i32, i32) {
    %c0_i32 = arith.constant 0 : i32
    %c0_i32_0 = arith.constant 0 : i32
    return %arg0, %arg1, %c0_i32 : i32, i32, i32
  }
}

</mosaic_0001>

<bundles_post_ra>
// kernel: tpu_custom_call.1
= control target key start
LH: loop header
LB: loop body
LE: loop exit
PB: predicated region body
PF: predicated region fallthrough
CT: control target
= control target key end

     0   :  { %s1758_s0 = inlined_call_operand.hbm [shape: f32[2,8,32], index: 0, kind: input, shape index: {}]   ;;  %s1759_s1 = inlined_call_operand.hbm [shape: f32[2,8,32], index: 1, kind: input, shape index: {}]   ;;  %s1760_s2 = inlined_call_operand.hbm [shape: f32[32,32], index: 2, kind: input, shape index: {}]   ;;  %s1761_s3 = inlined_call_operand.hbm [shape: f32[32,32], index: 3, kind: input, shape index: {}]   ;;  %s1762_s4 = inlined_call_operand.hbm [shape: f32[32,32], index: 4, kind: input, shape index: {}]   ;;  %s1763_s5 = inlined_call_operand.hbm [shape: f32[2,8,32], index: 5, kind: output, shape index: {0}]   ;;  %s1764_s6 = inlined_call_operand.hbm [shape: f32[2,8,8], index: 6, kind: output, shape index: {1}]  }
   0x1   :  { %1767 = sst [smem:[#allocation20_spill]] %s1758_s0 }
   0x2   :  { %1768 = sst [smem:[#allocation21_spill]] %s1760_s2 }
   0x3   :  { %1769 = sst [smem:[#allocation22_spill]] %s1761_s3 }
   0x4   :  { %1770 = sst [smem:[#allocation23_spill]] %s1762_s4 }
   0x5   :  { %12 = vsyncpa [#allocation3], 0 }
   0x6   :  { %14 = vsyncpa [#allocation3 + $0x1], 0 }
   0x7   :  { %15 = vsyncpa [#allocation6], 0 }
   0x8   :  { %17 = vsyncpa [#allocation6 + $0x1], 0 }
   0x9   :  { %18 = vsyncpa [#allocation9], 0 }
   0xa   :  { %19 = vsyncpa [#allocation4], 0 }
   0xb   :  { %21 = vsyncpa [#allocation4 + $0x1], 0 }
   0xc   :  { %22 = vsyncpa [#allocation13], 0 }
   0xd   :  { %24 = vsyncpa [#allocation13 + $0x1], 0  ;;  %s1483_s21 = smov 0   ;;  %s1485_s22 = smov 0  }
   0xe   :  { %s1487_s23 = smov 0   ;;  %s1489_s24 = smov 0  }
   0xf   :  { %s1491_s25 = smov 0   ;;  %s1493_s26 = smov 0  }
  0x10 LB: > { %s1514_s27 = sadd.s32 4294967295, %s1435_s26   ;;  %s974_s28 = sadd.s32 4294967294, %s1435_s26   ;;  %s1435_s26 = sphi %s1493_s26, %s30_s26   ;;  %s1431_s25 = sphi %s1491_s25, %s1793_s25   ;;  %s1427_s24 = sphi %s1489_s24, %s1792_s24   ;;  %s1423_s23 = sphi %s1487_s23, %s1791_s23   ;;  %s1419_s22 = sphi %s1485_s22, %s1790_s22   ;;  %s1415_s21 = sphi %s1483_s21, %s1789_s21  }
  0x11   : > { %p64_p0 = scmp.ne.s32.totalorder %s1419_s22, %s1415_s21  ;;  %p1765_p1 = scmp.eq.s32.totalorder %s1514_s27, 0 }
  0x12   : > { %p185_p3 = scmp.eq.s32.totalorder %s974_s28, 1  ;;  %p975_p5 = scmp.ge.s32.totalorder %s1435_s26, 1 }
  0x13   : > { %p1523_p4 = por %p1765_p1, %p64_p0  ;;  %p220_p7 = scmp.lt.s32.totalorder %s1435_s26, 3 }
  0x14   : > { %p1528_p6 = por %p185_p3, %p64_p0  ;;  %s1437_s8 = smov [#allocation7]  }
  0x15   : > { %s1771_s29 = scalar_select %p1523_p4, 1, 0 }
  0x16   : > { %s1772_s30 = scalar_select %p1528_p6, 1, 0 }
  0x17   : > { %p1533_p8 = pnand %p975_p5, %p220_p7  ;;  %s232_s9 = sshll.u32 %s1437_s8, 4  ;;  %s233_s9 = int_to_ptr.vmem [resolvable:$true] %s232_s9 }
  0x18   : > { %s1438_s11 = smov [#allocation8]   ;;  %s1439_s13 = smov [#allocation10]  }
  0x19   : > { %p1086_p9 = pneg %p1533_p8  ;;  %s245_s12 = sshll.u32 %s1438_s11, 4  ;;  %s246_s12 = int_to_ptr.vmem [resolvable:$true] %s245_s12 }
  0x1a   : > { %s258_s14 = sshll.u32 %s1439_s13, 4  ;;  %s1190_s15 = scalar_lea.vmem %s233_s9, 512  ;;  %s259_s14 = int_to_ptr.vmem [resolvable:$true] %s258_s14 }
  0x1b   : > { %p1542_p11 = pnand %p1086_p9, %p1765_p1  ;;  %p1191_p13 = scmp.ne.s32.totalorder %s233_s9, %s1190_s15 }
  0x1c   : > { %p1198_p5 = scmp.lt.s32.totalorder %s233_s9, %s233_s9  ;;  %p1199_p7 = scmp.lt.s32.totalorder %s1190_s15, %s1190_s15 }
  0x1d   : > { %p1181_p12 = pneg %p1542_p11 }
  0x1e   : > { %p1200_p9 = por %p1199_p7, %p1198_p5 }
  0x1f   : > { %p1193_p0 = pnand %p1191_p13, %p1181_p12 }
  0x21   : > { %p1194_p3 = pneg %p1193_p0 }
  0x23   : > { %p1201_p10 = pnand %p1200_p9, %p1194_p3 }
  0x25   : > { %1204 = shalt.err (!%p1201_p10)
}
  0x26   : > { %s1440_s16 = smov 128   ;;  %s1441_s17 = smov 8  }
  0x27   : > { %s1775_s2 = sld [smem:[#allocation21_spill]]  ;;  %s1216_s20 = scalar_lea.vmem %s246_s12, 512 }
  0x28   : > { %p1217_p1 = scmp.ne.s32.totalorder %s246_s12, %s1216_s20  ;;  %p1224_p2 = scmp.lt.s32.totalorder %s246_s12, %s246_s12 }
  0x29   : > { %p1225_p6 = scmp.lt.s32.totalorder %s1216_s20, %s1216_s20 }
  0x2a   : > { %p1219_p13 = pnand %p1217_p1, %p1181_p12 }
  0x2b   : > { %p1226_p5 = por %p1225_p6, %p1224_p2 }
  0x2c   : > { %p1220_p0 = pneg %p1219_p13 }
  0x2d   : > { %1089 = dma.hbm_to_vmem [thread:$0]  (!%p1542_p11), %s1775_s2, 512, %s233_s9, [#allocation6], %s1440_s16, %s1440_s16, %s1441_s17  }
  0x2e   : > { %p1227_p3 = pnand %p1226_p5, %p1220_p0 }
  0x30   : > { %1230 = shalt.err (!%p1227_p3)
}
  0x31   : > { %s1776_s3 = sld [smem:[#allocation22_spill]]  ;;  %s1242_s9 = scalar_lea.vmem %s259_s14, 512 }
  0x32   : > { %p1243_p10 = scmp.ne.s32.totalorder %s259_s14, %s1242_s9  ;;  %p1250_p9 = scmp.lt.s32.totalorder %s259_s14, %s259_s14 }
  0x33   : > { %p1251_p13 = scmp.lt.s32.totalorder %s1242_s9, %s1242_s9 }
  0x34   : > { %p1245_p7 = pnand %p1243_p10, %p1181_p12 }
  0x35   : > { %p1252_p4 = por %p1251_p13, %p1250_p9 }
  0x36   : > { %p1246_p1 = pneg %p1245_p7 }
  0x37   : > { %1092 = dma.hbm_to_vmem [thread:$0]  (!%p1542_p11), %s1776_s3, 512, %s246_s12, [#allocation9], %s1440_s16, %s1440_s16, %s1441_s17  }
  0x38   : > { %p1253_p2 = pnand %p1252_p4, %p1246_p1 }
  0x3a   : > { %1256 = shalt.err (!%p1253_p2)
}
  0x3b   : > { %s1777_s4 = sld [smem:[#allocation23_spill]]  ;;  %s51_s12 = sadd.s32 1, %s1423_s23 }
  0x3c   : > { %s42_s15 = sadd.s32 1, %s1431_s25  ;;  %p58_p4 = scmp.ne.s32.totalorder %s1423_s23, %s1419_s22 }
  0x3d   : > { %p44_p6 = scmp.ge.s32.totalorder %s42_s15, 2  ;;  %p59_p12 = scmp.eq.s32.totalorder %s1435_s26, 0 }
  0x3e   : > { %p1778_p0 = scmp.eq.s32.totalorder %s1514_s27, 1  ;;  %p1113_p3 = scmp.lt.s32.totalorder %s1435_s26, 2 }
  0x3f   : > { %s1795_s15 = smov (%p44_p6, %s42_s15), 0  ;;  %p60_p10 = por %p59_p12, %p58_p4 }
  0x40   : > { %p1579_p5 = por %p1778_p0, %p58_p4  ;;  %s272_s18 = sand.u32 1, %s1423_s23  }
  0x41   : > { %1095 = dma.hbm_to_vmem [thread:$0]  (!%p1542_p11), %s1777_s4, 512, %s259_s14, [#allocation9], %s1440_s16, %s1440_s16, %s1441_s17  }
  0x42   : > { %s46_s19 = ssub.s32 %s1431_s25, %s1795_s15  ;;  %s980_s14 = sshll.u32 %s272_s18, 3 }
  0x43   : > { %p49_p11 = scmp.eq.s32.totalorder %s46_s19, 0  ;;  %s981_s16 = sshll.u32 %s1431_s25, 7 }
  0x44   : > { %s1780_s0 = sld [smem:[#allocation20_spill]]  ;;  %s276_s9 = scalar_lea.vmem [#allocation2], %s980_s14 }
  0x45   : > { %s1591_s17 = scalar_select %p49_p11, %s1423_s23, %s51_s12  }
  0x46   : > { %s284_s11 = sshll.u32 %s276_s9, 4  ;;  %p1598_p7 = pnand %p1113_p3, %p60_p10  ;;  %s285_s11 = int_to_ptr.vmem [resolvable:$true] %s284_s11 }
  0x47   : > { %s1605_s19 = scalar_lea.hbm %s1759_s1, %s981_s16  ;;  %s291_s12 = sand.u32 1, %s1435_s26  }
  0x48   : > { %s273_s4 = scalar_lea.sflag [#allocation3], %s272_s18  ;;  %p1259_p1 = pneg %p1598_p7 }
  0x49   : > { %s1270_s20 = scalar_lea.vmem %s285_s11, 128  ;;  %s1442_s28 = smov [#allocation2]  }
  0x4a   : > { %s282_s8 = scalar_lea.hbm %s1780_s0, %s981_s16  ;;  %p1271_p9 = scmp.ne.s32.totalorder %s285_s11, %s1270_s20 }
  0x4b   : > { %s1275_s9 = sshll.u32 %s1442_s28, 4  ;;  %s1276_s9 = int_to_ptr.vmem [resolvable:$false] %s1275_s9 }
  0x4c   : > { %p1273_p13 = pnand %p1271_p9, %p1259_p1  ;;  %s1277_s0 = scalar_lea.vmem %s1276_s9, 256 }
  0x4d   : > { %p1278_p4 = scmp.lt.s32.totalorder %s285_s11, %s1276_s9  ;;  %p1279_p6 = scmp.lt.s32.totalorder %s1277_s0, %s1270_s20 }
  0x4e   : > { %p1274_p2 = pneg %p1273_p13 }
  0x4f   : > { %p1280_p12 = por %p1279_p6, %p1278_p4 }
  0x51   : > { %p1281_p0 = pnand %p1280_p12, %p1274_p2 }
  0x53   : > { %1284 = shalt.err (!%p1281_p0)
}
  0x54   : > { %1099 = dma.hbm_to_vmem [thread:$0]  (!%p1598_p7), %s282_s8, 128, %s285_s11, %s273_s4  }
  0x55   : > { %s295_s2 = scalar_lea.vmem [#allocation5], %s980_s14  ;;  %s292_s18 = scalar_lea.sflag [#allocation6], %s291_s12 }
  0x56   : > { %s302_s3 = sshll.u32 %s295_s2, 4  ;;  %s1443_s28 = smov [#allocation5]   ;;  %s303_s3 = int_to_ptr.vmem [resolvable:$true] %s302_s3 }
  0x57   : > { %s1298_s16 = scalar_lea.vmem %s303_s3, 128  ;;  %s1303_s9 = sshll.u32 %s1443_s28, 4  ;;  %s1304_s9 = int_to_ptr.vmem [resolvable:$false] %s1303_s9 }
  0x58   : > { %p1299_p3 = scmp.ne.s32.totalorder %s303_s3, %s1298_s16  ;;  %s1305_s0 = scalar_lea.vmem %s1304_s9, 256 }
  0x59   : > { %p1306_p9 = scmp.lt.s32.totalorder %s303_s3, %s1304_s9  ;;  %p1307_p13 = scmp.lt.s32.totalorder %s1305_s0, %s1298_s16 }
  0x5a   : > { %p1301_p10 = pnand %p1299_p3, %p1259_p1 }
  0x5b   : > { %p1308_p2 = por %p1307_p13, %p1306_p9 }
  0x5c   : > { %p1302_p11 = pneg %p1301_p10 }
  0x5e   : > { %p1309_p4 = pnand %p1308_p2, %p1302_p11 }
  0x60   : > { %1312 = shalt.err (!%p1309_p4)
}
  0x61   : > { %1102 = dma.hbm_to_vmem [thread:$0]  (!%p1598_p7), %s1605_s19, 128, %s303_s3, %s292_s18  }
  0x62   : > { %311 = sbr.rel (%p1533_p8) target bundleno = 1243 (0x4db), region = 40  ;;  %s1624_s4 = sand.u32 (!%p1533_p8), 1, %s1419_s22  }
  0x63   : > { %s1627_s14 = sshll.u32 (!%p1533_p8), %s1624_s4, 3  ;;  %s314_s8 = scalar_lea.sflag (!%p1533_p8), [#allocation3], %s1624_s4 }
  0x64   : > { %s317_s11 = scalar_lea.vmem (!%p1533_p8), [#allocation2], %s1627_s14  ;;  %p1782_p1 = scmp.ne.s32.totalorder (!%p1533_p8), %s1771_s29, 0 }
  0x67   : > { %1390 = dma.done.wait (%p1782_p1), %s314_s8, 128  }
  0x68   : > { %1392 = vsyncadd (%p1782_p1), %s314_s8, 4294967168  ;;  %s322_s7 = sand.u32 1, %s1514_s27   ;;  %s326_s19 = scalar_lea.vmem [#allocation5], %s1627_s14 }
  0x69   : > { %s323_s13 = scalar_lea.sflag [#allocation6], %s322_s7 }
  0x6a   : > { %1394 = dma.done.wait (%p1782_p1), %s323_s13, 128  }
  0x6b   : > { %1396 = vsyncadd (%p1782_p1), %s323_s13, 4294967168  ;;  %p1783_p8 = scmp.eq.s32.totalorder %s1514_s27, 0 }
  0x6d   : > { %1398 = dma.done.wait (%p1783_p8), [#allocation6], 512   ;;  %p1784_p7 = pmov %p1783_p8 }
  0x6f   : > { %1400 = vsyncadd (%p1784_p7), [#allocation6], 4294966784  ;;  %p1785_p6 = pmov %p1784_p7 }
  0x71   : > { %1402 = dma.done.wait (%p1785_p6), [#allocation9], 1024   ;;  %p1786_p12 = pmov %p1785_p6 }
  0x72   : > { %v1444_v0 = vmov 0.0   ;;  %vm1445_vm0 = vmmov 0   ;;  %v382_v1 = vld [vmem:[#allocation7 + $0x18] sm:$0xff]  ;;  %v381_v2 = vld [vmem:[#allocation7 + $0x10] sm:$0xff]  ;;  %v380_v4 = vld [vmem:[#allocation7 + $0x8] sm:$0xff]  ;;  %vm383_vm1 = vcmask 261120  }
  0x73   : > { %1404 = vsyncadd (%p1786_p12), [#allocation9], 4294966272  ;;  %1023 = vmatprep.subr.mxu0 %v1444_v0  ;;  %1031 = vmatprep.mubr.msk.f32.mxu0 %vm1445_vm0, %v1444_v0  ;;  %v460_v3 = vld [vmem:[#allocation10 + $0x18] sm:$0xff]  ;;  %v459_v5 = vld [vmem:[#allocation10 + $0x10] sm:$0xff]  ;;  %vm607_vm2 = vcmask 64512   ;;  %s376_s27 = scalar_lea.vmem [#allocation12], %s1627_s14 }
  0x74   : > { %1034 = vmatprep.subr.mxu1 %v1444_v0  ;;  %1042 = vmatprep.mubr.msk.f32.mxu1 %vm1445_vm0, %v1444_v0  ;;  %v458_v6 = vld [vmem:[#allocation10 + $0x8] sm:$0xff]  ;;  %v379_v7 = vld [vmem:[#allocation7] sm:$0xff]  ;;  %v378_v10 = vld [vmem:[%s326_s19] sm:$0xff]  ;;  %s1000_s29 = sshll.u32 %s1427_s24, 7  ;;  %s809_s3 = sshll.u32 %s376_s27, 4  ;;  %s810_s3 = int_to_ptr.vmem [resolvable:$true] %s809_s3 }
  0x75   : > { %1024 = vmatpush3.msra.mxu0 %v382_v1  ;;  %1035 = vmatpush3.msra.mxu1 %v460_v3  ;;  %v377_v8 = vld [vmem:[%s317_s11] sm:$0xff]  ;;  %v698_v23 = vld [vmem:[#allocation8 + $0x18] sm:$0xff]  ;;  %v697_v24 = vld [vmem:[#allocation8 + $0x10] sm:$0xff]  ;;  %s807_s2 = scalar_lea.hbm %s1764_s6, %s1000_s29  ;;  %s781_s18 = scalar_lea.sflag [#allocation13], %s1624_s4 }
  0x76   : > { %1025 = vmatprep.subr.mxu0 %v1444_v0  ;;  %1036 = vmatprep.subr.mxu1 %v1444_v0  ;;  %v457_v9 = vld [vmem:[#allocation10] sm:$0xff]  ;;  %v696_v25 = vld [vmem:[#allocation8 + $0x8] sm:$0xff]  ;;  %s1313_s16 = scalar_lea.vmem %s810_s3, 128  ;;  %s1446_s28 = smov [#allocation12]  }
  0x77   : > { %1026 = vmatpush3.msra.mxu0 %v381_v2  ;;  %1037 = vmatpush3.msra.mxu1 %v459_v5  ;;  %v695_v32 = vld [vmem:[#allocation8] sm:$0xff]  ;;  %p1314_p0 = scmp.ne.s32.totalorder %s810_s3, %s1313_s16  ;;  %s1317_s9 = sshll.u32 %s1446_s28, 4  ;;  %s1318_s9 = int_to_ptr.vmem [resolvable:$false] %s1317_s9 }
  0x78   : > { %1027 = vmatprep.subr.mxu0 %v1444_v0  ;;  %1038 = vmatprep.subr.mxu1 %v1444_v0  ;;  %s1319_s0 = scalar_lea.vmem %s1318_s9, 256  ;;  %p1320_p11 = scmp.lt.s32.totalorder %s810_s3, %s1318_s9 }
  0x79   : > { %1028 = vmatpush3.msra.mxu0 %v380_v4  ;;  %1039 = vmatpush3.msra.mxu1 %v458_v6  ;;  %p1315_p3 = pnand %p1314_p0, %p1579_p5  ;;  %p1321_p9 = scmp.lt.s32.totalorder %s1319_s0, %s1313_s16 }
  0x7a   : > { %1029 = vmatprep.subr.mxu0 %v1444_v0  ;;  %1040 = vmatprep.subr.mxu1 %v1444_v0 }
  0x7b   : > { %1030 = vmatpush3.msra.mxu0 %v379_v7  ;;  %1041 = vmatpush3.msra.mxu1 %v457_v9  ;;  %p1316_p10 = pneg %p1315_p3  ;;  %p1322_p13 = por %p1321_p9, %p1320_p11 }
  0x7c   : > { %1032 = vmatmul.mubr.msk.f32.vlgmr.msra.gmra.mxu0 %vm383_vm1, %v377_v8  ;;  %1043 = vmatmul.mubr.msk.f32.vlgmr.msra.gmra.mxu1 %vm383_vm1, %v377_v8 }
  0x7d   : > { %1045 = vmatprep.subr.mxu1 %v1444_v0  ;;  %1047 = vmatprep.mubr.msk.f32.mxu1 %vm1445_vm0, %v1444_v0  ;;  %p1323_p2 = pnand %p1322_p13, %p1316_p10 }
  0x7e   : > { %1046 = vmatpush3.xpose.msk.msra.mxu1 %vm383_vm1, %v378_v10  ;;  %1055 = vmatprep.subr.mxu0 %v1444_v0 }
  0x7f   : > { %1050 = vmatprep.subr.mxu1 %v1444_v0  ;;  %1063 = vmatprep.mubr.msk.f32.mxu0 %vm1445_vm0, %v1444_v0 }
  0x80   : > { %1056 = vmatpush3.msra.mxu0 %v698_v23 }
  0x81   : > { %1057 = vmatprep.subr.mxu0 %v1444_v0 }
  0x82   : > { %1058 = vmatpush3.msra.mxu0 %v697_v24 }
  0x83   : > { %1059 = vmatprep.subr.mxu0 %v1444_v0 }
  0x84   : > { %1060 = vmatpush3.msra.mxu0 %v696_v25 }
  0x85   : > { %1061 = vmatprep.subr.mxu0 %v1444_v0 }
  0x86   : > { %1062 = vmatpush3.msra.mxu0 %v695_v32 }
 0x13c   : > { %v453_v11 = vpop.f32.mrf.mxu0  ;;  %v1676_v12 = vpop.f32.mrf.mxu1 }
 0x13d   : > { %1048 = vmatmul.mubr.msk.f32.vlgmr.msra.gmra.mxu1 %vm383_vm1, %v453_v11 }
 0x13e   : > { %v1033_v13 = vpop.f32.mrf.mxu0  ;;  %1051 = vmatpush3.msra.mxu1 %v378_v10  ;;  %1052 = vmatprep.mubr.msk.f32.mxu1 %vm1445_vm0, %v1444_v0  ;;  %v1044_v14 = vpop.f32.mrf.mxu1 }
 0x1fd   : > { %v603_v15 = vpop.f32.mrf.mxu1 }
 0x1fe   : > { %v608_v16 = vsel %vm607_vm2, %v603_v15, -inf }
 0x1ff   : > { %609 = vmax.xlane.f32.xlu0 %v608_v16  ;;  %v1049_v17 = vpop.f32.mrf.mxu1 }
 0x288   : > { %v610_v18 = vpop.xlane.xlu0 %609 }
 0x289   : > { %v611_v19 = vsub.f32 %v603_v15, %v610_v18 }
 0x28b   : > { %v612_v20 = vmul.f32 1.442695, %v611_v19 }
 0x28d   : > { %1173 = vpow2.f32 %v612_v20 }
 0x29a   : > { %v1174_v21 = vpop.eup %1173 }
 0x29b   : > { %v614_v22 = vsel %vm607_vm2, %v1174_v21, 0.0 }
 0x29c   : > { %615 = vadd.xlane.f32.xlu0 %v614_v22 }
 0x325   : > { %v616_v26 = vpop.xlane.xlu0 %615 }
 0x326   : > { %1175 = vrcp.f32 %v616_v26 }
 0x333   : > { %v1176_v27 = vpop.eup %1175 }
 0x334   : > { %v618_v28 = vmul.f32 %v1176_v27, %v616_v26 }
 0x336   : > { %v619_v29 = vsub.f32 2.0, %v618_v28 }
 0x338   : > { %v620_v30 = vmul.f32 %v1176_v27, %v619_v29 }
 0x33a   : > { %v621_v31 = vmul.f32 %v1174_v21, %v620_v30 }
 0x33c   : > { %1053 = vmatmul.mubr.msk.f32.vlgmr.msra.gmra.mxu1 %vm607_vm2, %v621_v31  ;;  %774 = vst.msk [vmem:[%s376_s27] sm:$0xff] %vm607_vm2, %v621_v31 }
 0x3fc   : > { %v691_v33 = vpop.f32.mrf.mxu1 }
 0x3fd   : > { %1064 = vmatmul.mubr.msk.f32.vlgmr.msra.gmra.mxu0 %vm383_vm1, %v691_v33 }
 0x3fe   : > { %v1054_v34 = vpop.f32.mrf.mxu1 }
 0x3ff   : > { %1326 = shalt.err (!%p1323_p2)
}
 0x400   : > { %s1327_s8 = scalar_lea.hbm %s807_s2, 128  ;;  %s1331_s13 = scalar_lea.hbm %s1764_s6, 256 }
 0x401   : > { %p1328_p4 = scmp.ne.s32.totalorder %s807_s2, %s1327_s8  ;;  %p1332_p7 = scmp.lt.s32.totalorder %s807_s2, %s1764_s6 }
 0x402   : > { %p1333_p6 = scmp.lt.s32.totalorder %s1331_s13, %s1327_s8 }
 0x403   : > { %p1329_p1 = pnand %p1328_p4, %p1579_p5 }
 0x404   : > { %p1334_p12 = por %p1333_p6, %p1332_p7 }
 0x405   : > { %p1330_p8 = pneg %p1329_p1 }
 0x407   : > { %p1335_p0 = pnand %p1334_p12, %p1330_p8 }
 0x409   : > { %1338 = shalt.err (!%p1335_p0)
}
 0x40a   : > { %1083 = dma.vmem_to_hbm [thread:$0]  (%p1579_p5), %s810_s3, 128, %s807_s2, %s781_s18  }
 0x40b   : > { %s369_s12 = scalar_lea.vmem [#allocation11], %s1627_s14  ;;  %s1715_s9 = scalar_lea.hbm %s1763_s5, %s1000_s29 }
 0x40c   : > { %s795_s20 = sshll.u32 %s369_s12, 4  ;;  %s776_s0 = scalar_lea.sflag [#allocation4], %s1624_s4  ;;  %s796_s20 = int_to_ptr.vmem [resolvable:$true] %s795_s20 }
 0x40d   : > { %s1339_s8 = scalar_lea.vmem %s796_s20, 128  ;;  %s1447_s2 = smov [#allocation11]  }
 0x40e   : > { %p1340_p3 = scmp.ne.s32.totalorder %s796_s20, %s1339_s8  ;;  %s1343_s3 = sshll.u32 %s1447_s2, 4  ;;  %s1344_s3 = int_to_ptr.vmem [resolvable:$false] %s1343_s3 }
 0x40f   : > { %s1345_s14 = scalar_lea.vmem %s1344_s3, 256  ;;  %p1346_p9 = scmp.lt.s32.totalorder %s796_s20, %s1344_s3 }
 0x410   : > { %p1341_p10 = pnand %p1340_p3, %p1579_p5  ;;  %p1347_p13 = scmp.lt.s32.totalorder %s1345_s14, %s1339_s8 }
 0x412   : > { %p1342_p11 = pneg %p1341_p10  ;;  %p1348_p2 = por %p1347_p13, %p1346_p9 }
 0x414   : > { %p1349_p4 = pnand %p1348_p2, %p1342_p11 }
 0x4bd   : > { %v768_v35 = vpop.f32.mrf.mxu0 }
 0x4be   : > { %v769_v36 = vadd.f32 %v768_v35, %v1676_v12 }
 0x4bf   : > { %v1065_v37 = vpop.f32.mrf.mxu0 }
 0x4c0   : > { %1177 = vtanh.f32 %v769_v36 }
 0x4cd   : > { %v1178_v38 = vpop.eup %1177 }
 0x4ce   : > { %773 = vst.msk [vmem:[%s369_s12] sm:$0xff] %vm383_vm1, %v1178_v38 }
 0x4cf   : > { %1352 = shalt.err (!%p1349_p4)
}
 0x4d0   : > { %s1353_s24 = scalar_lea.hbm %s1715_s9, 128  ;;  %s1357_s18 = scalar_lea.hbm %s1763_s5, 256 }
 0x4d1   : > { %p1354_p1 = scmp.ne.s32.totalorder %s1715_s9, %s1353_s24  ;;  %p1358_p6 = scmp.lt.s32.totalorder %s1715_s9, %s1763_s5 }
 0x4d2   : > { %p1359_p12 = scmp.lt.s32.totalorder %s1357_s18, %s1353_s24 }
 0x4d3   : > { %p1355_p8 = pnand %p1354_p1, %p1579_p5 }
 0x4d4   : > { %p1360_p0 = por %p1359_p12, %p1358_p6 }
 0x4d5   : > { %p1356_p7 = pneg %p1355_p8 }
 0x4d7   : > { %p1361_p3 = pnand %p1360_p0, %p1356_p7 }
 0x4d9   : > { %1364 = shalt.err (!%p1361_p3)
}
 0x4da   : > { %1082 = dma.vmem_to_hbm [thread:$0]  (%p1579_p5), %s796_s20, 128, %s1715_s9, %s776_s0  }
 0x4db PF: > { %s821_s13 = sand.u32 1, %s1415_s21   ;;  %p1787_p10 = scmp.ne.s32.totalorder %s1772_s30, 0 }
 0x4dc   : > { %p1788_p11 = scmp.ge.s32.totalorder %s1435_s26, 2  ;;  %s822_s19 = scalar_lea.sflag [#allocation4], %s821_s13 }
 0x4de   : > { %p1104_p9 = pnand %p1788_p11, %p1787_p10 }
 0x4e0   : > { %p1105_p13 = pneg %p1104_p9 }
 0x4e2   : > { %1406 = dma.done.wait (%p1105_p13), %s822_s19, 128  }
 0x4e3   : > { %1408 = vsyncadd (%p1105_p13), %s822_s19, 4294967168  ;;  %s831_s27 = scalar_lea.sflag [#allocation13], %s821_s13 }
 0x4e4   : > { %1410 = dma.done.wait (%p1105_p13), %s831_s27, 128  }
 0x4e5   : > { %1412 = vsyncadd (%p1105_p13), %s831_s27, 4294967168  ;;  %s30_s26 = sadd.s32 1, %s1435_s26   ;;  %s1789_s21 = smov %s1419_s22 }
 0x4e6   : > { %p27_p2 = scmp.ge.s32.totalorder %s30_s26, 4   ;;  %s1790_s22 = smov %s1423_s23 }
 0x4e7   : > { %s1791_s23 = smov %s1591_s17  ;;  %s1792_s24 = smov %s1431_s25 }
 0x4e8   : > { %s1793_s25 = smov %s1795_s15  ;;  %29 = sbr.rel (!%p27_p2) target bundleno = 16 (0x10), region = 127 }
 0x4ed   :  { %836 = vsyncpa [#allocation3], 1 }
 0x4ee   :  { %838 = vsyncpa [#allocation3 + $0x1], 1 }
 0x4ef   :  { %839 = vsyncpa [#allocation6], 1 }
 0x4f0   :  { %841 = vsyncpa [#allocation6 + $0x1], 1 }
 0x4f1   :  { %842 = vsyncpa [#allocation9], 1 }
 0x4f2   :  { %843 = vsyncpa [#allocation4], 1 }
 0x4f3   :  { %845 = vsyncpa [#allocation4 + $0x1], 1 }
 0x4f4   :  { %846 = vsyncpa [#allocation13], 1 }
 0x4f5   :  { %848 = vsyncpa [#allocation13 + $0x1], 1 }

</bundles_post_ra>
